<compile_context>
chip_gen: v6e
topology: v6e:2x2x1
jax: 0.10.0
libtpu: 0.0.40
codegen_flags: <defaults>
</compile_context>

<pallas_src>
import functools

import numpy as np
import jax
import jax.numpy as jnp
from jax import lax
from jax.experimental import pallas as pl
from jax.experimental.pallas import tpu as pltpu


# ----------------------------------------------------------------------------
# Kernels
# ----------------------------------------------------------------------------
def _hull_cos_kernel(h_ref, keep_ref, out_ref):
    """fea1 tile: out = where(keep, h, cos(h)).

    h_ref:    (TR, L) tile of h (possibly a lane-dense flat view of (N, H)).
    keep_ref: (1, L) f32 mask, 1.0 where the original column index is 0.
    """
    h = h_ref[...]
    keep = keep_ref[...] != 0.0                      # (1, L), broadcasts over rows
    out_ref[...] = jnp.where(keep, h, jnp.cos(h)).astype(out_ref.dtype)


def _edge_gather_kernel(idx_ref, r_ref, out_ref, *, n_chunk, mm_dtype):
    """fea2 tile: fused interleaved gather r[idx] via chunked one-hot matmul.

    idx_ref: (T, 1) int32 interleaved endpoints [row0, col0, row1, col1, ...].
    r_ref:   (N, F) node features, VMEM-resident (constant index_map).
    out_ref: (T, F); rows are already in row-major (E, 2, F) order.
    """
    n_nodes, f = r_ref.shape
    idx = idx_ref[...]                                # (T, 1) int32
    t = idx.shape[0]

    acc = jnp.zeros((t, f), jnp.float32)
    # Chunk the contraction over node blocks so the one-hot intermediate is
    # (T, n_chunk) rather than (T, N).  Static Python loop (N is static).
    for start in range(0, n_nodes, n_chunk):
        size = min(n_chunk, n_nodes - start)
        r_blk = r_ref[start:start + size, :].astype(mm_dtype)          # (size, F)
        node_ids = lax.broadcasted_iota(jnp.int32, (t, size), 1) + start
        onehot = (node_ids == idx).astype(mm_dtype)                    # (T, size)
        acc = acc + jnp.dot(onehot, r_blk, preferred_element_type=jnp.float32)

    out_ref[...] = acc.astype(out_ref.dtype)


# ----------------------------------------------------------------------------
# Helpers
# ----------------------------------------------------------------------------
def _sublane_multiple(dtype):
    """Sublane alignment: 8 for 32-bit, 16 for bf16/fp16, 32 for 8-bit dtypes."""
    itemsize = jnp.dtype(dtype).itemsize
    return max(8, 32 // max(itemsize, 1))


def _pick_tile(n, cap, mult):
    """Row-tile: full dim if it fits under the cap, else a large aligned tile.

    Divisibility is NOT required — grids use pl.cdiv and ragged last blocks.
    """
    if n <= cap:
        return n
    return max((cap // mult) * mult, mult)


# ----------------------------------------------------------------------------
# Wrapper
# ----------------------------------------------------------------------------
def emb_hull_forward(r, h, edge_index, *, hull_cos=True):
    """r: (N, F) or (N,), h: (N, H), edge_index: (2, E) int -> (fea1, fea2)."""
    N, H = h.shape
    r2 = r if r.ndim == 2 else r[:, None]
    assert r2.shape[0] == N
    F = r2.shape[1]
    E = edge_index.shape[1]

    # ---- fea1: h with cos applied to columns >= 1 -----------------------------
    if hull_cos:
        mult_h = _sublane_multiple(h.dtype)
        if H <= 128 and 128 % H == 0 and (N * H) % 128 == 0:
            # Lane-dense flat view: (N, H) -> (N*H/128, 128), row-major (no copy).
            L = 128
            R = (N * H) // L
            keep_np = (np.arange(L) % H == 0).astype(np.float32)
            h_view = h.reshape(R, L)
        else:
            # Fallback: operate on (N, H) directly; mask is "column == 0".
            L = H
            R = N
            keep_np = (np.arange(H) == 0).astype(np.float32)
            h_view = h

        keep = jnp.asarray(keep_np).reshape(1, L)
        tile_r = _pick_tile(R, cap=2048, mult=mult_h)

        fea1_view = pl.pallas_call(
            _hull_cos_kernel,
            out_shape=jax.ShapeDtypeStruct((R, L), h.dtype),
            grid=(pl.cdiv(R, tile_r),),
            in_specs=[
                pl.BlockSpec((tile_r, L), lambda i: (i, 0)),
                pl.BlockSpec((1, L), lambda i: (0, 0)),      # constant mask
            ],
            out_specs=pl.BlockSpec((tile_r, L), lambda i: (i, 0)),
            compiler_params=pltpu.CompilerParams(dimension_semantics=("parallel",)),
        )(h_view, keep)
        fea1 = fea1_view.reshape(N, H)
    else:
        fea1 = h

    # ---- fea2: interleaved gather [r[row_e], r[col_e]] per edge -----------------
    # Interleave endpoints so one gather produces the row-major (E, 2, F) layout.
    idx = jnp.transpose(edge_index).reshape(2 * E, 1).astype(jnp.int32)

    mm_dtype = jnp.bfloat16 if r2.dtype == jnp.bfloat16 else jnp.float32
    n_chunk = min(N, 512)
    mult_r = _sublane_multiple(r2.dtype)
    tile_e = _pick_tile(2 * E, cap=2048, mult=mult_r)

    fea2_flat = pl.pallas_call(
        functools.partial(_edge_gather_kernel, n_chunk=n_chunk, mm_dtype=mm_dtype),
        out_shape=jax.ShapeDtypeStruct((2 * E, F), r2.dtype),
        grid=(pl.cdiv(2 * E, tile_e),),
        in_specs=[
            pl.BlockSpec((tile_e, 1), lambda i: (i, 0)),     # interleaved indices
            pl.BlockSpec((N, F), lambda i: (0, 0)),          # r, VMEM-resident
        ],
        out_specs=pl.BlockSpec((tile_e, F), lambda i: (i, 0)),
        compiler_params=pltpu.CompilerParams(dimension_semantics=("parallel",)),
    )(idx, r2)

    fea2 = fea2_flat.reshape(E, 2, F)        # layout-preserving; no transpose
    if r.ndim == 1:
        fea2 = fea2.reshape(E, 2)            # match torch output when r is 1-D
    return fea1, fea2


# ----------------------------------------------------------------------------
# Pure-JAX reference mirroring the PyTorch forward
# ----------------------------------------------------------------------------
def emb_hull_reference(r, h, edge_index, *, hull_cos=True):
    row, col = edge_index[0], edge_index[1]
    r2 = r if r.ndim == 2 else r[:, None]
    fea2 = jnp.concatenate([r2[row][:, None, :], r2[col][:, None, :]], axis=1)
    if r.ndim == 1:
        fea2 = fea2[..., 0]
    if hull_cos:
        h = h.at[:, 1:].set(jnp.cos(h[:, 1:]))
    return h, fea2


if __name__ == "__main__":
    N, H, F, E = 16, 32, 4, 64
    key = jax.random.PRNGKey(0)
    kr, kh, ke = jax.random.split(key, 3)

    r = jax.random.normal(kr, (N, F), jnp.float32)
    h = jax.random.normal(kh, (N, H), jnp.float32)
    edge_index = jax.random.randint(ke, (2, E), 0, N, dtype=jnp.int32)

    fea1, fea2 = emb_hull_forward(r, h, edge_index, hull_cos=True)
    jax.block_until_ready((fea1, fea2))

    fea1_ref, fea2_ref = emb_hull_reference(r, h, edge_index, hull_cos=True)
    assert fea1.shape == (N, H) and fea2.shape == (E, 2, F)
    assert jnp.allclose(fea1, fea1_ref, rtol=1e-6, atol=1e-6)
    assert jnp.allclose(fea2, fea2_ref, rtol=1e-6, atol=1e-6)

    print("KERNEL_OK")
</pallas_src>

<mosaic_0001>
module attributes {stable_mosaic.version = 11 : i64} {
  func.func @_hull_cos_kernel(%arg0: i32, %arg1: memref<4x128xf32, #tpu.memory_space<vmem>>, %arg2: memref<1x128xf32, #tpu.memory_space<vmem>>, %arg3: memref<4x128xf32, #tpu.memory_space<vmem>>) attributes {dimension_semantics = [#tpu.dimension_semantics<parallel>], iteration_bounds = array<i64: 1>, scalar_prefetch = 0 : i64, scratch_operands = 0 : i64, tpu.core_type = #tpu.core_type<tc>, window_params = [{transform_indices = @transform_0, window_bounds = array<i64: 4, 128>}, {pipeline_mode = #tpu.pipeline_mode<synchronous>, transform_indices = @transform_1, window_bounds = array<i64: 1, 128>}, {transform_indices = @transform_2, window_bounds = array<i64: 4, 128>}]} {
    %c0 = arith.constant 0 : index
    %c0_0 = arith.constant 0 : index
    %0 = vector.load %arg1[%c0, %c0_0] : memref<4x128xf32, #tpu.memory_space<vmem>>, vector<4x128xf32>
    %c0_1 = arith.constant 0 : index
    %c0_2 = arith.constant 0 : index
    %1 = vector.load %arg2[%c0_1, %c0_2] : memref<1x128xf32, #tpu.memory_space<vmem>>, vector<1x128xf32>
    %cst = arith.constant 0.000000e+00 : f32
    %2 = vector.broadcast %cst : f32 to vector<1x128xf32>
    %3 = arith.cmpf one, %1, %2 : vector<1x128xf32>
    %4 = math.cos %0 : vector<4x128xf32>
    %5 = vector.shape_cast %3 : vector<1x128xi1> to vector<1x128xi1>
    %6 = vector.broadcast %5 : vector<1x128xi1> to vector<4x128xi1>
    %7 = arith.select %6, %0, %4 : vector<4x128xi1>, vector<4x128xf32>
    %c0_3 = arith.constant 0 : index
    %c0_4 = arith.constant 0 : index
    %8 = vector.load %arg3[%c0_3, %c0_4] : memref<4x128xf32, #tpu.memory_space<vmem>>, vector<4x128xf32>
    tpu.vector_store %arg3[%c0_3, %c0_4], %7 {strides = array<i32>} : memref<4x128xf32, #tpu.memory_space<vmem>>, vector<4x128xf32>,
    return
  }
  func.func @transform_0(%arg0: i32) -> (i32, i32) {
    %c0_i32 = arith.constant 0 : i32
    %c0_i32_0 = arith.constant 0 : i32
    return %arg0, %c0_i32 : i32, i32
  }
  func.func @transform_1(%arg0: i32) -> (i32, i32) {
    %c0_i32 = arith.constant 0 : i32
    %c0_i32_0 = arith.constant 0 : i32
    %c0_i32_1 = arith.constant 0 : i32
    return %c0_i32, %c0_i32_0 : i32, i32
  }
  func.func @transform_2(%arg0: i32) -> (i32, i32) {
    %c0_i32 = arith.constant 0 : i32
    %c0_i32_0 = arith.constant 0 : i32
    return %arg0, %c0_i32 : i32, i32
  }
}

</mosaic_0001>

<bundles_post_ra>
// kernel: tpu_custom_call.1
= control target key start
LH: loop header
LB: loop body
LE: loop exit
PB: predicated region body
PF: predicated region fallthrough
CT: control target
= control target key end

     0   :  { %7 = vsyncpa [#allocation3], 0  ;;  %s273_s0 = inlined_call_operand.hbm [shape: f32[4,128], index: 0, kind: input, shape index: {}]   ;;  %s274_s1 = inlined_call_operand.vmem [shape: f32[1,128], index: 1, kind: input, shape index: {}]   ;;  %s275_s2 = inlined_call_operand.hbm [shape: f32[4,128], index: 2, kind: output, shape index: {}]  }
   0x1   :  { %8 = vsyncpa [#allocation4], 0  ;;  %s218_s9 = smov [#allocation2]  }
   0x2   :  { %s15_s10 = sshll.u32 %s218_s9, 4  ;;  %s16_s10 = int_to_ptr.vmem [resolvable:$true] %s15_s10 }
   0x3   :  { %s182_s11 = scalar_lea.vmem %s16_s10, 64  ;;  %p187_p1 = scmp.lt.s32.totalorder %s16_s10, %s16_s10 }
   0x4   :  { %p183_p0 = scmp.ne.s32.totalorder %s16_s10, %s182_s11  ;;  %p188_p2 = scmp.lt.s32.totalorder %s182_s11, %s182_s11 }
   0x6   :  { %p189_p3 = por %p188_p2, %p187_p1 }
   0x8   :  { %p190_p4 = pnand %p189_p3, %p183_p0 }
   0xa   :  { %193 = shalt.err (!%p190_p4)
}
   0xb   :  { %18 = dma.hbm_to_vmem [thread:$0]  %s273_s0, 64, %s16_s10, [#allocation3]  }
   0xc   :  { %214 = dma.done.wait [#allocation3], 64  }
   0xd   :  { %215 = vsyncadd [#allocation3], 4294967232  ;;  %v245_v0 = vld [vmem:[#allocation2] sm:$0xf]  ;;  %v219_v12 = vmov 683565275  }
   0xe   :  { %v30_v1 = vand.u32 2139095040, %v245_v0  ;;  %v27_v3 = vand.u32 2147483647, %v245_v0  ;;  %v220_v14 = vmov 2475754826   ;;  %vm29_vm7 = vcmp.lt.s32.totalorder %v245_v0, 0 }
   0xf   :  { %v221_v16 = vmov 2131351028   ;;  %v222_v18 = vmov 2102212464   ;;  %v223_v20 = vmov 920167782   ;;  %vm119_vm13 = vweird.f32 %v245_v0 }
  0x10   :  { %v31_v2 = vshrl.u32 %v30_v1, 23  ;;  %v34_v6 = vand.u32 8388607, %v27_v3  ;;  %v224_v27 = vmov 1326507024   ;;  %s226_s15 = smov [#allocation5]  }
  0x11   :  { %vm28_vm8 = vcmp.le.f32.partialorder %v27_v3, 0.7853982 }
  0x12   :  { %v153_v4 = vadd.s32 4294967169, %v31_v2  ;;  %v35_v9 = vor.u32 8388608, %v34_v6 }
  0x14   :  { %v37_v5 = vadd.s32 1, %v153_v4  ;;  %v75_v29 = vshll.u32 %v35_v9, 8 }
  0x16   :  { %vm38_vm0 = vcmp.gt.s32.totalorder %v37_v5, 0 }
  0x17   :  { %v39_v7 = vsel %vm38_vm0, %v37_v5, 0 }
  0x18   :  { %v41_v8 = vand.u32 31, %v39_v7  ;;  %v40_v10 = vshrl.u32 %v39_v7, 5 }
  0x1a   :  { %v42_v11 = vsub.s32 32, %v41_v8  ;;  %v44_v13 = vshll.u32 %v219_v12, %v41_v8  ;;  %v47_v15 = vshll.u32 %v220_v14, %v41_v8  ;;  %v50_v17 = vshll.u32 %v221_v16, %v41_v8 }
  0x1b   :  { %v53_v19 = vshll.u32 %v222_v18, %v41_v8  ;;  %v56_v21 = vshll.u32 %v223_v20, %v41_v8  ;;  %vm59_vm1 = vcmp.lt.s32.totalorder %v40_v10, 1  ;;  %vm62_vm2 = vcmp.lt.s32.totalorder %v40_v10, 4 }
  0x1c   :  { %v43_v22 = vshrl.u32 %v219_v12, %v42_v11  ;;  %v45_v23 = vshrl.u32 %v220_v14, %v42_v11  ;;  %v48_v24 = vshrl.u32 %v221_v16, %v42_v11  ;;  %v51_v25 = vshrl.u32 %v222_v18, %v42_v11 }
  0x1d   :  { %v54_v26 = vshrl.u32 %v223_v20, %v42_v11  ;;  %v57_v28 = vshrl.u32 %v224_v27, %v42_v11  ;;  %vm60_vm3 = vcmp.lt.s32.totalorder %v40_v10, 2  ;;  %vm61_vm4 = vcmp.lt.s32.totalorder %v40_v10, 3  ;;  %v25_v20 = vld [vmem:[%s274_s1] sm:$0x1]  ;;  %s144_s1 = sshll.u32 %s226_s15, 4  ;;  %s145_s1 = int_to_ptr.vmem [resolvable:$true] %s144_s1 }
  0x1e   :  { %v46_v30 = vor.u32 %v45_v23, %v44_v13  ;;  %v49_v31 = vor.u32 %v48_v24, %v47_v15  ;;  %v52_v32 = vor.u32 %v51_v25, %v50_v17  ;;  %v131_v18 = vlaneseq  ;;  %s194_s16 = scalar_lea.vmem %s145_s1, 64  ;;  %p199_p6 = scmp.lt.s32.totalorder %s145_s1, %s145_s1 }
  0x1f   :  { %v55_v33 = vor.u32 %v54_v26, %v53_v19  ;;  %v58_v34 = vor.u32 %v57_v28, %v56_v21  ;;  %vm26_vm9 = vcmp.ne.f32.partialorder %v25_v20, 0.0  ;;  %v225_v25 = vmov 0   ;;  %p195_p5 = scmp.ne.s32.totalorder %s145_s1, %s194_s16  ;;  %p200_p7 = scmp.lt.s32.totalorder %s194_s16, %s194_s16 }
  0x20   :  { %v63_v35 = vsel %vm59_vm1, %v43_v22, %v46_v30  ;;  %v64_v36 = vsel %vm62_vm2, %v52_v32, 2102212464  ;;  %v67_v37 = vsel %vm59_vm1, %v46_v30, %v49_v31  ;;  %v71_v38 = vsel %vm59_vm1, %v49_v31, %v52_v32 }
  0x21   :  { %v65_v39 = vsel %vm61_vm4, %v49_v31, %v64_v36  ;;  %v68_v40 = vsel %vm62_vm2, %v55_v33, 920167782  ;;  %v72_v41 = vsel %vm62_vm2, %v58_v34, 1326507024  ;;  %v132_v21 = vshrl.u32 %v131_v18, 7  ;;  %p201_p8 = por %p200_p7, %p199_p6 }
  0x22   :  { %v69_v42 = vsel %vm61_vm4, %v52_v32, %v68_v40  ;;  %v73_v43 = vsel %vm61_vm4, %v55_v33, %v72_v41  ;;  %v66_v44 = vsel %vm60_vm3, %v63_v35, %v65_v39  ;;  %v130_v3 = vsel %vm26_vm9, 1, %v225_v25 }
  0x23   :  { %v70_v45 = vsel %vm60_vm3, %v67_v37, %v69_v42  ;;  %v74_v46 = vsel %vm60_vm3, %v71_v38, %v73_v43  ;;  %v82_v51 = vmul.u32 %v75_v29, %v66_v44  ;;  %v133_v24 = vsub.s32 0, %v132_v21  ;;  %p202_p9 = pnand %p201_p8, %p195_p5 }
  0x24   :  { %v251_v47 = vmul.u32.u64.low %v75_v29, %v74_v46  ;;  %v252_v48 = vmul.u32.u64.high %v75_v29, %v74_v46, %v251_v47  ;;  %v254_v49 = vmul.u32.u64.low %v75_v29, %v70_v45  ;;  %v255_v50 = vmul.u32.u64.high %v75_v29, %v70_v45, %v254_v49 }
  0x25   :  { %v134_v27 = vrot.slane %v130_v3, %v133_v24 }
  0x26   :  { %vm84_vm5 = vc.u32 %v252_v48, %v254_v49  ;;  %v85_v52 = vadd.s32 1, %v255_v50  ;;  %v83_v63 = vadd.s32 %v254_v49, %v252_v48 }
  0x27   :  { %vm135_vm14 = vcmp.eq.s32.totalorder %v134_v27, 1 }
  0x28   :  { %v86_v53 = vsel %vm84_vm5, %v85_v52, %v255_v50 }
  0x29   :  { %v87_v54 = vadd.s32 %v86_v53, %v82_v51 }
  0x2b   :  { %v88_v55 = vadd.s32 536870912, %v87_v54 }
  0x2d   :  { %v89_v56 = vshrl.u32 %v88_v55, 30 }
  0x2f   :  { %v90_v57 = vshll.u32 %v89_v56, 30  ;;  %v113_v16 = vsub.s32 4, %v89_v56 }
  0x31   :  { %v91_v58 = vsub.s32 %v87_v54, %v90_v57  ;;  %v114_v19 = vsel %vm29_vm7, %v113_v16, %v89_v56 }
  0x32   :  { %v116_v22 = vsel %vm28_vm8, 0, %v114_v19 }
  0x33   :  { %v93_v59 = vsub.s32 0, %v91_v58  ;;  %v120_v23 = vand.u32 3, %v116_v22 }
  0x35   :  { %v154_v60 = vmin.u32 %v93_v59, %v91_v58  ;;  %vm125_vm10 = vcmp.eq.s32.totalorder %v120_v23, 2  ;;  %vm122_vm11 = vcmp.eq.s32.totalorder %v120_v23, 0  ;;  %vm121_vm12 = vcmp.lt.s32.totalorder %v120_v23, 2 }
  0x37   :  { %v95_v61 = vclz %v154_v60 }
  0x39   :  { %v155_v62 = vadd.s32 4294967294, %v95_v61 }
  0x3b   :  { %vm156_vm6 = vcmp.lt.s32.totalorder %v155_v62, 0 }
  0x3c   :  { %v98_v1 = vsel %vm156_vm6, 0, %v155_v62 }
  0x3d   :  { %v99_v2 = vsub.s32 32, %v98_v1  ;;  %v100_v4 = vshll.u32 %v91_v58, %v98_v1  ;;  %v103_v5 = vsub.s32 4294967266, %v98_v1 }
  0x3f   :  { %v101_v6 = vshrl.u32 %v83_v63, %v99_v2  ;;  %v104_v7 = vadd.s32 127, %v103_v5 }
  0x41   :  { %v102_v8 = vor.u32 %v101_v6, %v100_v4  ;;  %v105_v9 = vshll.u32 %v104_v7, 23 }
  0x43   :  { %v106_v10 = vor.u32 4788187, %v105_v9  ;;  %v109_v11 = vcvt.s32.f32 %v102_v8 }
  0x45   :  { %v107_v12 = vand.u32 2147483647, %v106_v10 }
  0x47   :  { %v110_v13 = vmul.f32 %v109_v11, %v107_v12 }
  0x49   :  { %v111_v14 = vxor.u32 2147483648, %v110_v13 }
  0x4b   :  { %v112_v15 = vsel %vm29_vm7, %v111_v14, %v110_v13 }
  0x4c   :  { %v115_v17 = vsel %vm28_vm8, %v245_v0, %v112_v15 }
  0x4d   :  { %170 = vcosq.f32 %v115_v17 }
  0x4e   :  { %172 = vsinq.f32 %v115_v17 }
  0x5a   :  { %v171_v26 = vpop.eup %170 }
  0x5b   :  { %v173_v28 = vpop.eup %172  ;;  %v126_v29 = vxor.u32 2147483648, %v171_v26 }
  0x5c   :  { %v123_v30 = vxor.u32 2147483648, %v173_v28 }
  0x5d   :  { %v127_v31 = vsel %vm125_vm10, %v126_v29, %v173_v28 }
  0x5e   :  { %v124_v32 = vsel %vm122_vm11, %v171_v26, %v123_v30 }
  0x5f   :  { %v128_v33 = vsel %vm121_vm12, %v124_v32, %v127_v31 }
  0x60   :  { %v129_v34 = vsel %vm119_vm13, nan, %v128_v33 }
  0x61   :  { %v136_v35 = vsel %vm135_vm14, %v245_v0, %v129_v34 }
  0x62   :  { %137 = vst [vmem:[#allocation5] sm:$0xf] %v136_v35 }
  0x63   :  { %205 = shalt.err (!%p202_p9)
}
  0x64   :  { %147 = dma.vmem_to_hbm [thread:$0]  %s145_s1, 64, %s275_s2, [#allocation4]  }
  0x65   :  { %216 = dma.done.wait [#allocation4], 64  }
  0x66   :  { %217 = vsyncadd [#allocation4], 4294967232 }
  0x67   :  { %151 = vsyncpa [#allocation3], 1 }
  0x68   :  { %152 = vsyncpa [#allocation4], 1 }

</bundles_post_ra>
